<compile_context>
chip_gen: v5e
topology: v5e:2x2
jax: 0.10.0
libtpu: 0.0.40
codegen_flags: <defaults>
</compile_context>

<pallas_src>
import functools

import numpy as np
import jax
import jax.numpy as jnp
from jax.experimental import pallas as pl
from jax.experimental.pallas import tpu as pltpu

# small, lane-aligned config (input_dim, hidden_dim, output_dim of LocalEmbedding)
BATCH, SEQ = 2, 16
DIN, HID, DOUT = 128, 256, 128
BN_EPS = 1e-5


# ------------------------------ Pallas kernel ---------------------------------
def local_embedding_kernel(x_ref, w1_ref, b1_ref, g1_ref, be1_ref,
                           w2_ref, b2_ref, o_ref, *, n_valid, n_rows):
    x = x_ref[...]                                                      # (N, DIN) f32

    # Conv1d(DIN, HID, kernel_size=1)  ==  x @ W1 + b1   (MXU, f32 accumulate)
    h = jnp.dot(x, w1_ref[...], preferred_element_type=jnp.float32) + b1_ref[...]

    # Row-validity mask only materialized when the wrapper had to pad (static branch).
    if n_valid != n_rows:
        row = jax.lax.broadcasted_iota(jnp.int32, (n_rows, 1), 0)
        valid = (row < n_valid).astype(jnp.float32)                     # (N, 1)
    else:
        valid = None
    inv_n = 1.0 / float(n_valid)

    def bn_scale_shift(t, gamma, beta):
        # Per-channel batch stats (biased variance), folded into one scale + shift so the
        # normalization applies as a single fma over the full (N, C) tensor.
        if valid is None:
            mu = jnp.sum(t, axis=0, keepdims=True) * inv_n
            var = jnp.sum(jnp.square(t - mu), axis=0, keepdims=True) * inv_n
        else:
            mu = jnp.sum(t * valid, axis=0, keepdims=True) * inv_n
            var = jnp.sum(jnp.square(t - mu) * valid, axis=0, keepdims=True) * inv_n
        scale = gamma * jax.lax.rsqrt(var + BN_EPS)                     # (1, C)
        shift = beta - mu * scale                                       # (1, C)
        return scale, shift

    # BatchNorm1d(HID) + ReLU
    s1, t1 = bn_scale_shift(h, g1_ref[...], be1_ref[...])
    h = jnp.maximum(h * s1 + t1, 0.0)

    # Conv1d(HID, DOUT, kernel_size=1)
    y = jnp.dot(h, w2_ref[...], preferred_element_type=jnp.float32) + b2_ref[...]

    # BatchNorm1d(DOUT, affine=False)
    s2, t2 = bn_scale_shift(y, jnp.float32(1.0), jnp.float32(0.0))
    o_ref[...] = y * s2 + t2                                            # lane-dense store


# ------------------------------ wrapper ----------------------------------------
def local_embedding(x, params):
    B, S, Din = x.shape
    n = B * S
    n_pad = ((n + 7) // 8) * 8                  # sublane-align the row dim
    x2d = x.reshape(n, Din)                     # flatten batch into the token dim
    if n_pad != n:
        x2d = jnp.pad(x2d, ((0, n_pad - n), (0, 0)))

    vmem = pl.BlockSpec(memory_space=pltpu.MemorySpace.VMEM)
    kernel = functools.partial(local_embedding_kernel, n_valid=n, n_rows=n_pad)
    out2d = pl.pallas_call(
        kernel,
        out_shape=jax.ShapeDtypeStruct((n_pad, DOUT), jnp.float32),
        in_specs=[vmem] * 7,
        out_specs=vmem,
    )(x2d, params["w1"], params["b1"], params["g1"], params["be1"],
      params["w2"], params["b2"])
    return out2d[:n].reshape(B, S, DOUT)


# ------------------------------ parameters --------------------------------------
def init_params(key):
    ks = jax.random.split(key, 5)
    scale = 0.02
    return {
        # Conv1d weights stored (in_features, out_features) -> y = x @ W + b
        "w1":  (scale * jax.random.normal(ks[0], (DIN, HID))).astype(jnp.float32),
        "b1":  (scale * jax.random.normal(ks[1], (1, HID))).astype(jnp.float32),
        # BatchNorm1d(HID) affine params
        "g1":  (1.0 + scale * jax.random.normal(ks[2], (1, HID))).astype(jnp.float32),
        "be1": (scale * jax.random.normal(ks[3], (1, HID))).astype(jnp.float32),
        "w2":  (scale * jax.random.normal(ks[4], (HID, DOUT))).astype(jnp.float32),
        "b2":  jnp.zeros((1, DOUT), jnp.float32),
        # BatchNorm1d(DOUT, affine=False): no gamma/beta
    }


# ------------------------------ pure-JAX reference ------------------------------
def local_embedding_ref(x, p):
    B, S, _ = x.shape
    h = x.reshape(B * S, DIN) @ p["w1"] + p["b1"]
    mu1 = h.mean(0, keepdims=True)
    var1 = ((h - mu1) ** 2).mean(0, keepdims=True)
    h = (h - mu1) / jnp.sqrt(var1 + BN_EPS) * p["g1"] + p["be1"]
    h = jnp.maximum(h, 0.0)
    y = h @ p["w2"] + p["b2"]
    mu2 = y.mean(0, keepdims=True)
    var2 = ((y - mu2) ** 2).mean(0, keepdims=True)
    y = (y - mu2) / jnp.sqrt(var2 + BN_EPS)
    return y.reshape(B, S, DOUT)


# ------------------------------ main ---------------------------------------------
if __name__ == "__main__":
    key = jax.random.PRNGKey(0)
    pkey, xkey = jax.random.split(key)
    params = init_params(pkey)
    x = jax.random.normal(xkey, (BATCH, SEQ, DIN), dtype=jnp.float32)

    out = jax.block_until_ready(jax.jit(local_embedding)(x, params))
    ref = local_embedding_ref(x, params)

    assert out.shape == (BATCH, SEQ, DOUT)
    np.testing.assert_allclose(np.asarray(out), np.asarray(ref), rtol=2e-5, atol=2e-5)
    print("KERNEL_OK")
</pallas_src>

<mosaic_0001>
module attributes {stable_mosaic.version = 11 : i64} {
  func.func @local_embedding_kernel(%arg0: memref<32x128xf32, #tpu.memory_space<vmem>>, %arg1: memref<128x256xf32, #tpu.memory_space<vmem>>, %arg2: memref<1x256xf32, #tpu.memory_space<vmem>>, %arg3: memref<1x256xf32, #tpu.memory_space<vmem>>, %arg4: memref<1x256xf32, #tpu.memory_space<vmem>>, %arg5: memref<256x128xf32, #tpu.memory_space<vmem>>, %arg6: memref<1x128xf32, #tpu.memory_space<vmem>>, %arg7: memref<32x128xf32, #tpu.memory_space<vmem>>) attributes {dimension_semantics = [], scalar_prefetch = 0 : i64, scratch_operands = 0 : i64, tpu.core_type = #tpu.core_type<tc>} {
    %c0 = arith.constant 0 : index
    %c0_0 = arith.constant 0 : index
    %0 = vector.load %arg0[%c0, %c0_0] : memref<32x128xf32, #tpu.memory_space<vmem>>, vector<32x128xf32>
    %c0_1 = arith.constant 0 : index
    %c0_2 = arith.constant 0 : index
    %1 = vector.load %arg1[%c0_1, %c0_2] : memref<128x256xf32, #tpu.memory_space<vmem>>, vector<128x256xf32>
    %cst = arith.constant dense<0.000000e+00> : vector<32x256xf32>
    %2 = tpu.matmul %0, %1, %cst {dimension_numbers = #tpu.dot_dimension_numbers<[1], [0], [0], [1], [0, 0, 1, 1], [], []>} : vector<32x128xf32>, vector<128x256xf32>, vector<32x256xf32> -> vector<32x256xf32>
    %c0_3 = arith.constant 0 : index
    %c0_4 = arith.constant 0 : index
    %3 = vector.load %arg2[%c0_3, %c0_4] : memref<1x256xf32, #tpu.memory_space<vmem>>, vector<1x256xf32>
    %4 = vector.broadcast %3 : vector<1x256xf32> to vector<32x256xf32>
    %5 = arith.addf %2, %4 : vector<32x256xf32>
    %c0_5 = arith.constant 0 : index
    %c0_6 = arith.constant 0 : index
    %6 = vector.load %arg3[%c0_5, %c0_6] : memref<1x256xf32, #tpu.memory_space<vmem>>, vector<1x256xf32>
    %c0_7 = arith.constant 0 : index
    %c0_8 = arith.constant 0 : index
    %7 = vector.load %arg4[%c0_7, %c0_8] : memref<1x256xf32, #tpu.memory_space<vmem>>, vector<1x256xf32>
    %cst_9 = arith.constant dense<0.000000e+00> : vector<256xf32>
    %8 = vector.multi_reduction <add>, %5, %cst_9 [0] : vector<32x256xf32> to vector<256xf32>
    %9 = vector.shape_cast %8 : vector<256xf32> to vector<1x256xf32>
    %cst_10 = arith.constant 3.125000e-02 : f32
    %10 = vector.broadcast %cst_10 : f32 to vector<1x256xf32>
    %11 = arith.mulf %9, %10 : vector<1x256xf32>
    %12 = vector.broadcast %11 : vector<1x256xf32> to vector<32x256xf32>
    %13 = arith.subf %5, %12 : vector<32x256xf32>
    %14 = arith.mulf %13, %13 : vector<32x256xf32>
    %cst_11 = arith.constant dense<0.000000e+00> : vector<256xf32>
    %15 = vector.multi_reduction <add>, %14, %cst_11 [0] : vector<32x256xf32> to vector<256xf32>
    %16 = vector.shape_cast %15 : vector<256xf32> to vector<1x256xf32>
    %cst_12 = arith.constant 3.125000e-02 : f32
    %17 = vector.broadcast %cst_12 : f32 to vector<1x256xf32>
    %18 = arith.mulf %16, %17 : vector<1x256xf32>
    %cst_13 = arith.constant 9.99999974E-6 : f32
    %19 = vector.broadcast %cst_13 : f32 to vector<1x256xf32>
    %20 = arith.addf %18, %19 : vector<1x256xf32>
    %21 = math.rsqrt %20 : vector<1x256xf32>
    %22 = arith.mulf %6, %21 : vector<1x256xf32>
    %23 = arith.mulf %11, %22 : vector<1x256xf32>
    %24 = arith.subf %7, %23 : vector<1x256xf32>
    %25 = vector.broadcast %22 : vector<1x256xf32> to vector<32x256xf32>
    %26 = arith.mulf %5, %25 : vector<32x256xf32>
    %27 = vector.broadcast %24 : vector<1x256xf32> to vector<32x256xf32>
    %28 = arith.addf %26, %27 : vector<32x256xf32>
    %cst_14 = arith.constant 0.000000e+00 : f32
    %29 = vector.broadcast %cst_14 : f32 to vector<32x256xf32>
    %30 = arith.maximumf %28, %29 : vector<32x256xf32>
    %c0_15 = arith.constant 0 : index
    %c0_16 = arith.constant 0 : index
    %31 = vector.load %arg5[%c0_15, %c0_16] : memref<256x128xf32, #tpu.memory_space<vmem>>, vector<256x128xf32>
    %cst_17 = arith.constant dense<0.000000e+00> : vector<32x128xf32>
    %32 = tpu.matmul %30, %31, %cst_17 {dimension_numbers = #tpu.dot_dimension_numbers<[1], [0], [0], [1], [0, 0, 1, 1], [], []>} : vector<32x256xf32>, vector<256x128xf32>, vector<32x128xf32> -> vector<32x128xf32>
    %c0_18 = arith.constant 0 : index
    %c0_19 = arith.constant 0 : index
    %33 = vector.load %arg6[%c0_18, %c0_19] : memref<1x128xf32, #tpu.memory_space<vmem>>, vector<1x128xf32>
    %34 = vector.broadcast %33 : vector<1x128xf32> to vector<32x128xf32>
    %35 = arith.addf %32, %34 : vector<32x128xf32>
    %cst_20 = arith.constant dense<0.000000e+00> : vector<128xf32>
    %36 = vector.multi_reduction <add>, %35, %cst_20 [0] : vector<32x128xf32> to vector<128xf32>
    %37 = vector.shape_cast %36 : vector<128xf32> to vector<1x128xf32>
    %cst_21 = arith.constant 3.125000e-02 : f32
    %38 = vector.broadcast %cst_21 : f32 to vector<1x128xf32>
    %39 = arith.mulf %37, %38 : vector<1x128xf32>
    %40 = vector.broadcast %39 : vector<1x128xf32> to vector<32x128xf32>
    %41 = arith.subf %35, %40 : vector<32x128xf32>
    %42 = arith.mulf %41, %41 : vector<32x128xf32>
    %cst_22 = arith.constant dense<0.000000e+00> : vector<128xf32>
    %43 = vector.multi_reduction <add>, %42, %cst_22 [0] : vector<32x128xf32> to vector<128xf32>
    %44 = vector.shape_cast %43 : vector<128xf32> to vector<1x128xf32>
    %cst_23 = arith.constant 3.125000e-02 : f32
    %45 = vector.broadcast %cst_23 : f32 to vector<1x128xf32>
    %46 = arith.mulf %44, %45 : vector<1x128xf32>
    %cst_24 = arith.constant 9.99999974E-6 : f32
    %47 = vector.broadcast %cst_24 : f32 to vector<1x128xf32>
    %48 = arith.addf %46, %47 : vector<1x128xf32>
    %49 = math.rsqrt %48 : vector<1x128xf32>
    %cst_25 = arith.constant 1.000000e+00 : f32
    %50 = vector.broadcast %cst_25 : f32 to vector<1x128xf32>
    %51 = arith.mulf %50, %49 : vector<1x128xf32>
    %52 = arith.mulf %39, %51 : vector<1x128xf32>
    %cst_26 = arith.constant 0.000000e+00 : f32
    %53 = vector.broadcast %cst_26 : f32 to vector<1x128xf32>
    %54 = arith.subf %53, %52 : vector<1x128xf32>
    %55 = vector.broadcast %51 : vector<1x128xf32> to vector<32x128xf32>
    %56 = arith.mulf %35, %55 : vector<32x128xf32>
    %57 = vector.broadcast %54 : vector<1x128xf32> to vector<32x128xf32>
    %58 = arith.addf %56, %57 : vector<32x128xf32>
    %c0_27 = arith.constant 0 : index
    %c0_28 = arith.constant 0 : index
    %59 = vector.load %arg7[%c0_27, %c0_28] : memref<32x128xf32, #tpu.memory_space<vmem>>, vector<32x128xf32>
    tpu.vector_store %arg7[%c0_27, %c0_28], %58 {strides = array<i32>} : memref<32x128xf32, #tpu.memory_space<vmem>>, vector<32x128xf32>,
    return
  }
}

</mosaic_0001>

<bundles_post_ra>
// kernel: local_embedding.1
= control target key start
LH: loop header
LB: loop body
LE: loop exit
PB: predicated region body
PF: predicated region fallthrough
CT: control target
= control target key end

     0   :  { %12 = vsyncpa [#allocation3], 0  ;;  %s804_s0 = inlined_call_operand.hbm [shape: f32[32,128], index: 0, kind: input, shape index: {}]   ;;  %s805_s1 = inlined_call_operand.hbm [shape: f32[128,256], index: 1, kind: input, shape index: {}]   ;;  %s806_s2 = inlined_call_operand.hbm [shape: f32[1,256], index: 2, kind: input, shape index: {}]   ;;  %s807_s3 = inlined_call_operand.vmem [shape: f32[1,256], index: 3, kind: input, shape index: {}]   ;;  %s808_s4 = inlined_call_operand.hbm [shape: f32[1,256], index: 4, kind: input, shape index: {}]   ;;  %s809_s5 = inlined_call_operand.hbm [shape: f32[256,128], index: 5, kind: input, shape index: {}]   ;;  %s810_s6 = inlined_call_operand.vmem [shape: f32[1,128], index: 6, kind: input, shape index: {}]   ;;  %s811_s7 = inlined_call_operand.hbm [shape: f32[32,128], index: 7, kind: output, shape index: {}]  }
   0x1   :  { %13 = vsyncpa [#allocation6], 0 }
   0x2   :  { %14 = vsyncpa [#allocation9], 0  ;;  %s33_s26 = sshll.u32 %s805_s1, 4  ;;  %s34_s26 = int_to_ptr.hbm [resolvable:$true] %s33_s26 }
   0x3   :  { %15 = vsyncpa [#allocation4], 0  ;;  %s667_s27 = smov [#allocation5]   ;;  %s60_s8 = sshll.u32 %s808_s4, 4  ;;  %s61_s8 = int_to_ptr.hbm [resolvable:$true] %s60_s8 }
   0x4   :  { %s35_s28 = sshll.u32 %s667_s27, 4  ;;  %s668_s9 = smov 256   ;;  %s36_s28 = int_to_ptr.vmem [resolvable:$true] %s35_s28 }
   0x5   :  { %s669_s10 = smov 16   ;;  %s670_s11 = smov [#allocation8]  }
   0x6   :  { %41 = dma.hbm_to_vmem [thread:$0]  %s34_s26, 4096, %s36_s28, [#allocation6], %s668_s9, %s668_s9, %s669_s10  }
   0x7   :  { %s62_s12 = sshll.u32 %s670_s11, 4  ;;  %s20_s15 = sshll.u32 %s804_s0, 4  ;;  %s63_s12 = int_to_ptr.vmem [resolvable:$true] %s62_s12  ;;  %s21_s15 = int_to_ptr.hbm [resolvable:$true] %s20_s15 }
   0x8   :  { %65 = dma.hbm_to_vmem [thread:$0]  %s61_s8, 32, %s63_s12, [#allocation9]  }
   0x9   :  { %s671_s1 = smov [#allocation2]   ;;  %s47_s4 = sshll.u32 %s806_s2, 4  ;;  %s48_s4 = int_to_ptr.hbm [resolvable:$true] %s47_s4 }
   0xa   :  { %s22_s16 = sshll.u32 %s671_s1, 4  ;;  %s672_s19 = smov 128   ;;  %s23_s16 = int_to_ptr.vmem [resolvable:$true] %s22_s16 }
   0xb   :  { %s673_s20 = smov 8   ;;  %s674_s21 = smov [#allocation7]  }
   0xc   :  { %28 = dma.hbm_to_vmem [thread:$0]  %s21_s15, 512, %s23_s16, [#allocation3], %s672_s19, %s672_s19, %s673_s20  }
   0xd   :  { %s49_s22 = sshll.u32 %s674_s21, 4  ;;  %s70_s24 = sshll.u32 %s809_s5, 4  ;;  %s50_s22 = int_to_ptr.vmem [resolvable:$true] %s49_s22  ;;  %s71_s24 = int_to_ptr.hbm [resolvable:$true] %s70_s24 }
   0xe   :  { %52 = dma.hbm_to_vmem [thread:$0]  %s48_s4, 32, %s50_s22, [#allocation6]  }
   0xf   :  { %s675_s25 = smov [#allocation10]  }
  0x10   :  { %s72_s26 = sshll.u32 %s675_s25, 4  ;;  %s73_s26 = int_to_ptr.vmem [resolvable:$true] %s72_s26 }
  0x11   :  { %78 = dma.hbm_to_vmem [thread:$0]  %s71_s24, 4096, %s73_s26, [#allocation9], %s672_s19, %s672_s19, %s673_s20  }
  0x12   :  { %659 = dma.done.wait [#allocation3], 512  }
  0x13   :  { %660 = vsyncadd [#allocation3], 4294966784 }
  0x14   :  { %661 = dma.done.wait [#allocation6], 4128  }
  0x15   :  { %662 = vsyncadd [#allocation6], 4294963168 }
  0x16   :  { %663 = dma.done.wait [#allocation9], 4128  }
  0x17   :  { %664 = vsyncadd [#allocation9], 4294963168  ;;  %v135_v0 = vld [vmem:[#allocation5 + $0xf0] sm:$0xff]  ;;  %v136_v1 = vld [vmem:[#allocation5 + $0xf8] sm:$0xff]  ;;  %vm284_vm5 = vcmask 1040384   ;;  %s483_s8 = sshll.u32 %s811_s7, 4  ;;  %s484_s8 = int_to_ptr.hbm [resolvable:$true] %s483_s8 }
  0x18   :  { %v133_v2 = vld [vmem:[#allocation5 + $0xe0] sm:$0xff]  ;;  %143 = vmatpush.msra.mxu0 %v135_v0  ;;  %172 = vmatpush.msra.mxu1 %v136_v1  ;;  %v134_v3 = vld [vmem:[#allocation5 + $0xe8] sm:$0xff]  ;;  %v131_v4 = vld [vmem:[#allocation5 + $0xd0] sm:$0xff] }
  0x19   :  { %v132_v5 = vld [vmem:[#allocation5 + $0xd8] sm:$0xff]  ;;  %v129_v6 = vld [vmem:[#allocation5 + $0xc0] sm:$0xff]  ;;  %v130_v7 = vld [vmem:[#allocation5 + $0xc8] sm:$0xff] }
  0x1a   :  { %144 = vmatpush.msra.mxu0 %v133_v2  ;;  %173 = vmatpush.msra.mxu1 %v134_v3  ;;  %v127_v8 = vld [vmem:[#allocation5 + $0xb0] sm:$0xff]  ;;  %v128_v9 = vld [vmem:[#allocation5 + $0xb8] sm:$0xff]  ;;  %v125_v10 = vld [vmem:[#allocation5 + $0xa0] sm:$0xff] }
  0x1b   :  { %v126_v11 = vld [vmem:[#allocation5 + $0xa8] sm:$0xff]  ;;  %v123_v12 = vld [vmem:[#allocation5 + $0x90] sm:$0xff]  ;;  %v124_v13 = vld [vmem:[#allocation5 + $0x98] sm:$0xff] }
  0x1c   :  { %145 = vmatpush.msra.mxu0 %v131_v4  ;;  %174 = vmatpush.msra.mxu1 %v132_v5  ;;  %v121_v14 = vld [vmem:[#allocation5 + $0x80] sm:$0xff]  ;;  %v122_v15 = vld [vmem:[#allocation5 + $0x88] sm:$0xff]  ;;  %v119_v16 = vld [vmem:[#allocation5 + $0x70] sm:$0xff] }
  0x1d   :  { %v120_v17 = vld [vmem:[#allocation5 + $0x78] sm:$0xff]  ;;  %v117_v18 = vld [vmem:[#allocation5 + $0x60] sm:$0xff]  ;;  %v118_v19 = vld [vmem:[#allocation5 + $0x68] sm:$0xff] }
  0x1e   :  { %146 = vmatpush.msra.mxu0 %v129_v6  ;;  %175 = vmatpush.msra.mxu1 %v130_v7  ;;  %v115_v20 = vld [vmem:[#allocation5 + $0x50] sm:$0xff]  ;;  %v116_v21 = vld [vmem:[#allocation5 + $0x58] sm:$0xff]  ;;  %v113_v22 = vld [vmem:[#allocation5 + $0x40] sm:$0xff] }
  0x1f   :  { %v114_v23 = vld [vmem:[#allocation5 + $0x48] sm:$0xff]  ;;  %v111_v24 = vld [vmem:[#allocation5 + $0x30] sm:$0xff]  ;;  %v112_v25 = vld [vmem:[#allocation5 + $0x38] sm:$0xff] }
  0x20   :  { %147 = vmatpush.msra.mxu0 %v127_v8  ;;  %176 = vmatpush.msra.mxu1 %v128_v9  ;;  %v109_v26 = vld [vmem:[#allocation5 + $0x20] sm:$0xff]  ;;  %v110_v27 = vld [vmem:[#allocation5 + $0x28] sm:$0xff]  ;;  %v107_v28 = vld [vmem:[#allocation5 + $0x10] sm:$0xff] }
  0x21   :  { %v108_v29 = vld [vmem:[#allocation5 + $0x18] sm:$0xff]  ;;  %v105_v30 = vld [vmem:[#allocation5] sm:$0xff]  ;;  %v106_v31 = vld [vmem:[#allocation5 + $0x8] sm:$0xff] }
  0x22   :  { %148 = vmatpush.msra.mxu0 %v125_v10  ;;  %177 = vmatpush.msra.mxu1 %v126_v11  ;;  %v101_v32 = vld [vmem:[#allocation2] sm:$0xff]  ;;  %v102_v33 = vld [vmem:[#allocation2 + $0x8] sm:$0xff]  ;;  %v103_v34 = vld [vmem:[#allocation2 + $0x10] sm:$0xff] }
  0x23   :  { %v104_v35 = vld [vmem:[#allocation2 + $0x18] sm:$0xff]  ;;  %v137_v40 = vld [vmem:[#allocation7] sm:$0x3] }
  0x24   :  { %149 = vmatpush.msra.mxu0 %v123_v12  ;;  %178 = vmatpush.msra.mxu1 %v124_v13  ;;  %v139_v43 = vperm.slane %v137_v40, 0  ;;  %v140_v44 = vperm.slane %v137_v40, 1 }
  0x26   :  { %150 = vmatpush.msra.mxu0 %v121_v14  ;;  %179 = vmatpush.msra.mxu1 %v122_v15 }
  0x28   :  { %151 = vmatpush.msra.mxu0 %v119_v16  ;;  %180 = vmatpush.msra.mxu1 %v120_v17  ;;  %v345_v17 = vld [vmem:[#allocation10 + $0x78] sm:$0xff] }
  0x29   :  { %366 = vmatpush.msra.mxu2 %v345_v17  ;;  %v333_v17 = vld [vmem:[#allocation10 + $0x18] sm:$0xff] }
  0x2a   :  { %152 = vmatpush.msra.mxu0 %v117_v18  ;;  %181 = vmatpush.msra.mxu1 %v118_v19  ;;  %v361_v18 = vld [vmem:[#allocation10 + $0xf8] sm:$0xff] }
  0x2b   :  { %395 = vmatpush.msra.mxu3 %v361_v18 }
  0x2c   :  { %153 = vmatpush.msra.mxu0 %v115_v20  ;;  %182 = vmatpush.msra.mxu1 %v116_v21 }
  0x2e   :  { %154 = vmatpush.msra.mxu0 %v113_v22  ;;  %183 = vmatpush.msra.mxu1 %v114_v23 }
  0x30   :  { %155 = vmatpush.msra.mxu0 %v111_v24  ;;  %184 = vmatpush.msra.mxu1 %v112_v25  ;;  %v344_v25 = vld [vmem:[#allocation10 + $0x70] sm:$0xff] }
  0x31   :  { %367 = vmatpush.msra.mxu2 %v344_v25  ;;  %v330_v25 = vld [vmem:[#allocation10] sm:$0xff] }
  0x32   :  { %156 = vmatpush.msra.mxu0 %v109_v26  ;;  %185 = vmatpush.msra.mxu1 %v110_v27  ;;  %v360_v26 = vld [vmem:[#allocation10 + $0xf0] sm:$0xff] }
  0x33   :  { %396 = vmatpush.msra.mxu3 %v360_v26  ;;  %v346_v26 = vld [vmem:[#allocation10 + $0x80] sm:$0xff] }
  0x34   :  { %157 = vmatpush.msra.mxu0 %v107_v28  ;;  %186 = vmatpush.msra.mxu1 %v108_v29 }
  0x36   :  { %158 = vmatpush.msra.mxu0 %v105_v30  ;;  %187 = vmatpush.msra.mxu1 %v106_v31  ;;  %v343_v31 = vld [vmem:[#allocation10 + $0x68] sm:$0xff] }
  0x37   :  { %159 = vmatmul.f32.vlgmr.msra.gmra.mxu0 %v101_v32  ;;  %188 = vmatmul.f32.vlgmr.msra.gmra.mxu1 %v101_v32  ;;  %v359_v32 = vld [vmem:[#allocation10 + $0xe8] sm:$0xff] }
  0x38   :  { %368 = vmatpush.msra.mxu2 %v343_v31  ;;  %397 = vmatpush.msra.mxu3 %v359_v32 }
  0x3f   :  { %162 = vmatmul.f32.gmra.mxu0 %v102_v33  ;;  %191 = vmatmul.f32.gmra.mxu1 %v102_v33 }
  0x47   :  { %165 = vmatmul.f32.gmra.mxu0 %v103_v34  ;;  %194 = vmatmul.f32.gmra.mxu1 %v103_v34 }
  0x4f   :  { %168 = vmatmul.f32.gmra.mxu0 %v104_v35  ;;  %197 = vmatmul.f32.gmra.mxu1 %v104_v35 }
  0xb4   :  { %v160_v36 = vpop.f32.mrf.mxu0  ;;  %v189_v37 = vpop.f32.mrf.mxu1 }
  0xb5   :  { %v742_v47 = vadd.f32 %v160_v36, %v139_v43  ;;  %v744_v48 = vadd.f32 %v189_v37, %v140_v44  ;;  %v342_v37 = vld [vmem:[#allocation10 + $0x60] sm:$0xff] }
  0xb6   :  { %369 = vmatpush.msra.mxu2 %v342_v37 }
  0xbc   :  { %v163_v38 = vpop.f32.mrf.mxu0  ;;  %v192_v39 = vpop.f32.mrf.mxu1 }
  0xbd   :  { %v738_v45 = vadd.f32 %v163_v38, %v139_v43  ;;  %v740_v46 = vadd.f32 %v192_v39, %v140_v44  ;;  %v358_v38 = vld [vmem:[#allocation10 + $0xe0] sm:$0xff] }
  0xbe   :  { %398 = vmatpush.msra.mxu3 %v358_v38 }
  0xbf   :  { %v203_v51 = vadd.f32 %v738_v45, %v742_v47  ;;  %v212_v52 = vadd.f32 %v740_v46, %v744_v48 }
  0xc4   :  { %v166_v41 = vpop.f32.mrf.mxu0  ;;  %v195_v42 = vpop.f32.mrf.mxu1 }
  0xc5   :  { %v746_v49 = vadd.f32 %v166_v41, %v139_v43  ;;  %v748_v50 = vadd.f32 %v195_v42, %v140_v44  ;;  %v341_v41 = vld [vmem:[#allocation10 + $0x58] sm:$0xff] }
  0xc6   :  { %v357_v42 = vld [vmem:[#allocation10 + $0xd8] sm:$0xff]  ;;  %370 = vmatpush.msra.mxu2 %v341_v41 }
  0xc7   :  { %v204_v55 = vadd.f32 %v203_v51, %v746_v49  ;;  %v213_v56 = vadd.f32 %v212_v52, %v748_v50  ;;  %v356_v51 = vld [vmem:[#allocation10 + $0xd0] sm:$0xff]  ;;  %399 = vmatpush.msra.mxu3 %v357_v42 }
  0xc9   :  { %400 = vmatpush.msra.mxu3 %v356_v51 }
  0xcc   :  { %v169_v53 = vpop.f32.mrf.mxu0  ;;  %v198_v54 = vpop.f32.mrf.mxu1 }
  0xcd   :  { %v756_v57 = vadd.f32 %v169_v53, %v139_v43  ;;  %v758_v58 = vadd.f32 %v198_v54, %v140_v44  ;;  %v340_v44 = vld [vmem:[#allocation10 + $0x50] sm:$0xff]  ;;  %v339_v53 = vld [vmem:[#allocation10 + $0x48] sm:$0xff] }
  0xce   :  { %371 = vmatpush.msra.mxu2 %v340_v44 }
  0xcf   :  { %v205_v59 = vadd.f32 %v204_v55, %v756_v57  ;;  %v214_v60 = vadd.f32 %v213_v56, %v758_v58  ;;  %v355_v55 = vld [vmem:[#allocation10 + $0xc8] sm:$0xff] }
  0xd0   :  { %372 = vmatpush.msra.mxu2 %v339_v53  ;;  %401 = vmatpush.msra.mxu3 %v355_v55 }
  0xd1   :  { %v206_v61 = vrot.slane %v205_v59, 4  ;;  %v215_v62 = vrot.slane %v214_v60, 4 }
  0xd3   :  { %v207_v63 = vadd.f32 %v206_v61, %v205_v59  ;;  %v216_v0 = vadd.f32 %v215_v62, %v214_v60  ;;  %v338_v59 = vld [vmem:[#allocation10 + $0x40] sm:$0xff] }
  0xd4   :  { %v354_v61 = vld [vmem:[#allocation10 + $0xc0] sm:$0xff]  ;;  %373 = vmatpush.msra.mxu2 %v338_v59 }
  0xd5   :  { %v208_v1 = vrot.slane %v207_v63, 2  ;;  %v217_v2 = vrot.slane %v216_v0, 2  ;;  %402 = vmatpush.msra.mxu3 %v354_v61 }
  0xd7   :  { %v209_v3 = vadd.f32 %v208_v1, %v207_v63  ;;  %v218_v4 = vadd.f32 %v217_v2, %v216_v0  ;;  %v337_v63 = vld [vmem:[#allocation10 + $0x38] sm:$0xff] }
  0xd8   :  { %v353_v1 = vld [vmem:[#allocation10 + $0xb8] sm:$0xff]  ;;  %374 = vmatpush.msra.mxu2 %v337_v63 }
  0xd9   :  { %v210_v5 = vrot.slane %v209_v3, 1  ;;  %v219_v6 = vrot.slane %v218_v4, 1  ;;  %403 = vmatpush.msra.mxu3 %v353_v1 }
  0xdb   :  { %v211_v7 = vadd.f32 %v210_v5, %v209_v3  ;;  %v220_v8 = vadd.f32 %v219_v6, %v218_v4  ;;  %v336_v3 = vld [vmem:[#allocation10 + $0x30] sm:$0xff] }
  0xdc   :  { %v352_v5 = vld [vmem:[#allocation10 + $0xb0] sm:$0xff]  ;;  %375 = vmatpush.msra.mxu2 %v336_v3 }
  0xdd   :  { %v762_v9 = vmul.f32 0.03125, %v211_v7  ;;  %v764_v10 = vmul.f32 0.03125, %v220_v8  ;;  %v335_v7 = vld [vmem:[#allocation10 + $0x28] sm:$0xff]  ;;  %404 = vmatpush.msra.mxu3 %v352_v5 }
  0xde   :  { %376 = vmatpush.msra.mxu2 %v335_v7 }
  0xdf   :  { %v223_v11 = vsub.f32 %v742_v47, %v762_v9  ;;  %v225_v12 = vsub.f32 %v738_v45, %v762_v9  ;;  %v227_v13 = vsub.f32 %v746_v49, %v762_v9  ;;  %v224_v14 = vsub.f32 %v744_v48, %v764_v10 }
  0xe0   :  { %v226_v15 = vsub.f32 %v740_v46, %v764_v10  ;;  %v228_v16 = vsub.f32 %v748_v50, %v764_v10  ;;  %v229_v19 = vsub.f32 %v756_v57, %v762_v9  ;;  %v230_v22 = vsub.f32 %v758_v58, %v764_v10 }
  0xe1   :  { %v231_v20 = vmul.f32 %v223_v11, %v223_v11  ;;  %v233_v21 = vmul.f32 %v225_v12, %v225_v12  ;;  %v232_v23 = vmul.f32 %v224_v14, %v224_v14  ;;  %v235_v27 = vmul.f32 %v227_v13, %v227_v13  ;;  %v351_v11 = vld [vmem:[#allocation10 + $0xa8] sm:$0xff]  ;;  %v334_v13 = vld [vmem:[#allocation10 + $0x20] sm:$0xff] }
  0xe2   :  { %v234_v24 = vmul.f32 %v226_v15, %v226_v15  ;;  %v236_v29 = vmul.f32 %v228_v16, %v228_v16  ;;  %v237_v33 = vmul.f32 %v229_v19, %v229_v19  ;;  %v238_v35 = vmul.f32 %v230_v22, %v230_v22  ;;  %v350_v15 = vld [vmem:[#allocation10 + $0xa0] sm:$0xff]  ;;  %405 = vmatpush.msra.mxu3 %v351_v11  ;;  %v349_v19 = vld [vmem:[#allocation10 + $0x98] sm:$0xff]  ;;  %v348_v22 = vld [vmem:[#allocation10 + $0x90] sm:$0xff] }
  0xe3   :  { %v239_v28 = vadd.f32 %v233_v21, %v231_v20  ;;  %377 = vmatpush.msra.mxu2 %v334_v13  ;;  %v332_v21 = vld [vmem:[#allocation10 + $0x10] sm:$0xff] }
  0xe4   :  { %v248_v30 = vadd.f32 %v234_v24, %v232_v23  ;;  %406 = vmatpush.msra.mxu3 %v350_v15  ;;  %v331_v23 = vld [vmem:[#allocation10 + $0x8] sm:$0xff] }
  0xe5   :  { %v240_v34 = vadd.f32 %v239_v28, %v235_v27  ;;  %378 = vmatpush.msra.mxu2 %v333_v17  ;;  %v347_v24 = vld [vmem:[#allocation10 + $0x88] sm:$0xff] }
  0xe6   :  { %v249_v36 = vadd.f32 %v248_v30, %v236_v29  ;;  %407 = vmatpush.msra.mxu3 %v349_v19 }
  0xe7   :  { %v241_v39 = vadd.f32 %v240_v34, %v237_v33  ;;  %379 = vmatpush.msra.mxu2 %v332_v21  ;;  %v508_v21 = vld [vmem:[%s810_s6] ss:$0 sm:$0xff]  ;;  %s676_s6 = smov [#allocation11]  }
  0xe8   :  { %v250_v40 = vadd.f32 %v249_v36, %v238_v35  ;;  %408 = vmatpush.msra.mxu3 %v348_v22  ;;  %s481_s28 = sshll.u32 %s676_s6, 4  ;;  %s482_s28 = int_to_ptr.vmem [resolvable:$true] %s481_s28 }
  0xe9   :  { %v242_v43 = vrot.slane %v241_v39, 4  ;;  %380 = vmatpush.msra.mxu2 %v331_v23 }
  0xea   :  { %v251_v52 = vrot.slane %v250_v40, 4  ;;  %409 = vmatpush.msra.mxu3 %v347_v24 }
  0xeb   :  { %v243_v54 = vadd.f32 %v242_v43, %v241_v39  ;;  %381 = vmatpush.msra.mxu2 %v330_v25 }
  0xec   :  { %v252_v56 = vadd.f32 %v251_v52, %v250_v40  ;;  %410 = vmatpush.msra.mxu3 %v346_v26  ;;  %v201_v40 = vld [vmem:[%s807_s3] sm:$0x3] }
  0xed   :  { %v244_v60 = vrot.slane %v243_v54, 2 }
  0xee   :  { %v253_v62 = vrot.slane %v252_v56, 2 }
  0xef   :  { %v245_v0 = vadd.f32 %v244_v60, %v243_v54  ;;  %v202_v54 = vld [vmem:[#allocation8] sm:$0x3] }
  0xf0   :  { %v254_v2 = vadd.f32 %v253_v62, %v252_v56 }
  0xf1   :  { %v246_v4 = vrot.slane %v245_v0, 1 }
  0xf2   :  { %v255_v6 = vrot.slane %v254_v2, 1 }
  0xf3   :  { %v247_v8 = vadd.f32 %v246_v4, %v245_v0 }
  0xf4   :  { %v256_v12 = vadd.f32 %v255_v6, %v254_v2 }
  0xf5   :  { %v257_v14 = vmul.f32 0.03125, %v247_v8 }
  0xf6   :  { %v258_v16 = vmul.f32 0.03125, %v256_v12 }
  0xf7   :  { %v259_v18 = vadd.f32 1e-05, %v257_v14 }
  0xf8   :  { %v260_v20 = vadd.f32 1e-05, %v258_v16 }
  0xf9   :  { %509 = vrsqrt.f32 %v259_v18  ;;  %vm267_vm4 = vweird.f32 %v259_v18 }
  0xfa   :  { %511 = vrsqrt.f32 %v260_v20  ;;  %vm277_vm2 = vweird.f32 %v260_v20 }
  0xff   :  { %v510_v27 = vpop.eup %509 }
 0x100   :  { %v512_v28 = vpop.eup %511  ;;  %v262_v29 = vmul.f32 %v510_v27, %v259_v18  ;;  %vm268_vm1 = vweird.f32 %v510_v27 }
 0x101   :  { %v272_v30 = vmul.f32 %v512_v28, %v260_v20  ;;  %vm278_vm0 = vweird.f32 %v512_v28  ;;  %vm269_vm6 = vmor %vm267_vm4, %vm268_vm1 }
 0x102   :  { %v263_v31 = vmul.f32 %v510_v27, %v262_v29  ;;  %vm279_vm3 = vmor %vm277_vm2, %vm278_vm0 }
 0x103   :  { %v273_v32 = vmul.f32 %v512_v28, %v272_v30 }
 0x104   :  { %v264_v33 = vmul.f32 0.5, %v263_v31 }
 0x105   :  { %v274_v34 = vmul.f32 0.5, %v273_v32 }
 0x106   :  { %v265_v35 = vsub.f32 1.5, %v264_v33 }
 0x107   :  { %v275_v36 = vsub.f32 1.5, %v274_v34 }
 0x108   :  { %v266_v37 = vmul.f32 %v510_v27, %v265_v35 }
 0x109   :  { %v276_v38 = vmul.f32 %v512_v28, %v275_v36 }
 0x10a   :  { %v270_v42 = vsel %vm269_vm6, %v510_v27, %v266_v37 }
 0x10b   :  { %v280_v39 = vsel %vm279_vm3, %v512_v28, %v276_v38 }
 0x10c   :  { %v283_v41 = vrot.slane %v280_v39, 7 }
 0x10e   :  { %v285_v43 = vsel %vm284_vm5, %v270_v42, %v283_v41 }
 0x10f   :  { %v287_v44 = vmul.f32 %v285_v43, %v201_v40 }
 0x111   :  { %v289_v51 = vperm.slane %v287_v44, 0  ;;  %v290_v52 = vperm.slane %v287_v44, 1 }
 0x113   :  { %v294_v53 = vmul.f32 %v290_v52, %v764_v10  ;;  %v293_v55 = vmul.f32 %v289_v51, %v762_v9  ;;  %v301_v61 = vmul.f32 %v289_v51, %v742_v47  ;;  %v302_v63 = vmul.f32 %v290_v52, %v744_v48 }
 0x114   :  { %v303_v10 = vmul.f32 %v289_v51, %v738_v45  ;;  %v304_v5 = vmul.f32 %v290_v52, %v740_v46  ;;  %v305_v47 = vmul.f32 %v289_v51, %v746_v49  ;;  %v306_v48 = vmul.f32 %v290_v52, %v748_v50 }
 0x115   :  { %v297_v56 = vrot.slane %v294_v53, 7  ;;  %v307_v45 = vmul.f32 %v289_v51, %v756_v57  ;;  %v308_v46 = vmul.f32 %v290_v52, %v758_v58 }
 0x117   :  { %v298_v59 = vsel %vm284_vm5, %v293_v55, %v297_v56 }
 0x118   :  { %v300_v60 = vsub.f32 %v202_v54, %v298_v59 }
 0x11a   :  { %v310_v62 = vperm.slane %v300_v60, 0  ;;  %v311_v0 = vperm.slane %v300_v60, 1 }
 0x11c   :  { %v314_v1 = vadd.f32 %v310_v62, %v301_v61  ;;  %v315_v2 = vadd.f32 %v311_v0, %v302_v63  ;;  %v316_v9 = vadd.f32 %v310_v62, %v303_v10  ;;  %v317_v6 = vadd.f32 %v311_v0, %v304_v5 }
 0x11d   :  { %v318_v11 = vadd.f32 %v310_v62, %v305_v47  ;;  %v319_v12 = vadd.f32 %v311_v0, %v306_v48  ;;  %v320_v15 = vadd.f32 %v310_v62, %v307_v45  ;;  %v321_v16 = vadd.f32 %v311_v0, %v308_v46 }
 0x11e   :  { %v322_v3 = vmax.f32 %v314_v1, 0.0  ;;  %v323_v4 = vmax.f32 %v315_v2, 0.0  ;;  %v324_v7 = vmax.f32 %v316_v9, 0.0  ;;  %v325_v8 = vmax.f32 %v317_v6, 0.0 }
 0x11f   :  { %v326_v13 = vmax.f32 %v318_v11, 0.0  ;;  %v327_v14 = vmax.f32 %v319_v12, 0.0  ;;  %v328_v17 = vmax.f32 %v320_v15, 0.0  ;;  %v329_v18 = vmax.f32 %v321_v16, 0.0 }
 0x120   :  { %382 = vmatmul.f32.vlgmr.msra.gmra.mxu2 %v322_v3  ;;  %411 = vmatmul.f32.vlgmr.msra.gmra.mxu3 %v323_v4 }
 0x128   :  { %385 = vmatmul.f32.gmra.mxu2 %v324_v7  ;;  %414 = vmatmul.f32.gmra.mxu3 %v325_v8 }
 0x130   :  { %388 = vmatmul.f32.gmra.mxu2 %v326_v13  ;;  %417 = vmatmul.f32.gmra.mxu3 %v327_v14 }
 0x138   :  { %391 = vmatmul.f32.gmra.mxu2 %v328_v17  ;;  %420 = vmatmul.f32.gmra.mxu3 %v329_v18 }
 0x1a3   :  { %v383_v19 = vpop.f32.mrf.mxu2  ;;  %v412_v49 = vpop.f32.mrf.mxu3 }
 0x1a4   :  { %v384_v57 = vadd.f32 %v508_v21, %v383_v19 }
 0x1a6   :  { %v413_v26 = vadd.f32 %v412_v49, %v384_v57 }
 0x1ab   :  { %v386_v20 = vpop.f32.mrf.mxu2  ;;  %v415_v50 = vpop.f32.mrf.mxu3 }
 0x1ac   :  { %v387_v24 = vadd.f32 %v508_v21, %v386_v20 }
 0x1ae   :  { %v416_v58 = vadd.f32 %v415_v50, %v387_v24 }
 0x1b0   :  { %v424_v29 = vadd.f32 %v416_v58, %v413_v26 }
 0x1b3   :  { %v389_v22 = vpop.f32.mrf.mxu2  ;;  %v418_v23 = vpop.f32.mrf.mxu3 }
 0x1b4   :  { %v390_v25 = vadd.f32 %v508_v21, %v389_v22 }
 0x1b6   :  { %v419_v27 = vadd.f32 %v418_v23, %v390_v25 }
 0x1b8   :  { %v425_v32 = vadd.f32 %v424_v29, %v419_v27 }
 0x1bb   :  { %v392_v28 = vpop.f32.mrf.mxu2  ;;  %v421_v31 = vpop.f32.mrf.mxu3 }
 0x1bc   :  { %v393_v30 = vadd.f32 %v508_v21, %v392_v28 }
 0x1be   :  { %v422_v33 = vadd.f32 %v421_v31, %v393_v30 }
 0x1c0   :  { %v426_v34 = vadd.f32 %v425_v32, %v422_v33 }
 0x1c2   :  { %v427_v35 = vrot.slane %v426_v34, 4 }
 0x1c4   :  { %v428_v36 = vadd.f32 %v427_v35, %v426_v34 }
 0x1c6   :  { %v429_v37 = vrot.slane %v428_v36, 2 }
 0x1c8   :  { %v430_v38 = vadd.f32 %v429_v37, %v428_v36 }
 0x1ca   :  { %v431_v39 = vrot.slane %v430_v38, 1 }
 0x1cc   :  { %v432_v40 = vadd.f32 %v431_v39, %v430_v38 }
 0x1ce   :  { %v433_v41 = vmul.f32 0.03125, %v432_v40 }
 0x1d0   :  { %v434_v42 = vsub.f32 %v413_v26, %v433_v41  ;;  %v435_v43 = vsub.f32 %v416_v58, %v433_v41  ;;  %v436_v44 = vsub.f32 %v419_v27, %v433_v41  ;;  %v437_v51 = vsub.f32 %v422_v33, %v433_v41 }
 0x1d2   :  { %v438_v52 = vmul.f32 %v434_v42, %v434_v42  ;;  %v439_v53 = vmul.f32 %v435_v43, %v435_v43  ;;  %v440_v54 = vmul.f32 %v436_v44, %v436_v44  ;;  %v441_v56 = vmul.f32 %v437_v51, %v437_v51 }
 0x1d4   :  { %v442_v55 = vadd.f32 %v439_v53, %v438_v52 }
 0x1d6   :  { %v443_v59 = vadd.f32 %v442_v55, %v440_v54 }
 0x1d8   :  { %v444_v60 = vadd.f32 %v443_v59, %v441_v56 }
 0x1da   :  { %v445_v61 = vrot.slane %v444_v60, 4 }
 0x1dc   :  { %v446_v62 = vadd.f32 %v445_v61, %v444_v60 }
 0x1de   :  { %v447_v63 = vrot.slane %v446_v62, 2 }
 0x1e0   :  { %v448_v0 = vadd.f32 %v447_v63, %v446_v62 }
 0x1e2   :  { %v449_v1 = vrot.slane %v448_v0, 1 }
 0x1e4   :  { %v450_v2 = vadd.f32 %v449_v1, %v448_v0 }
 0x1e6   :  { %v451_v3 = vmul.f32 0.03125, %v450_v2 }
 0x1e8   :  { %v452_v4 = vadd.f32 1e-05, %v451_v3 }
 0x1ea   :  { %513 = vrsqrt.f32 %v452_v4  ;;  %vm459_vm8 = vweird.f32 %v452_v4 }
 0x1f0   :  { %v514_v10 = vpop.eup %513 }
 0x1f1   :  { %v454_v5 = vmul.f32 %v514_v10, %v452_v4  ;;  %vm460_vm7 = vweird.f32 %v514_v10 }
 0x1f2   :  { %vm461_vm9 = vmor %vm459_vm8, %vm460_vm7 }
 0x1f3   :  { %v455_v9 = vmul.f32 %v514_v10, %v454_v5 }
 0x1f5   :  { %v456_v6 = vmul.f32 0.5, %v455_v9 }
 0x1f7   :  { %v457_v7 = vsub.f32 1.5, %v456_v6 }
 0x1f9   :  { %v458_v8 = vmul.f32 %v514_v10, %v457_v7 }
 0x1fb   :  { %v462_v47 = vsel %vm461_vm9, %v514_v10, %v458_v8 }
 0x1fc   :  { %v463_v48 = vmul.f32 %v462_v47, %v433_v41  ;;  %v468_v12 = vmul.f32 %v462_v47, %v422_v33  ;;  %v465_v13 = vmul.f32 %v462_v47, %v413_v26  ;;  %v466_v14 = vmul.f32 %v462_v47, %v416_v58 }
 0x1fd   :  { %v467_v45 = vmul.f32 %v462_v47, %v419_v27 }
 0x1fe   :  { %v464_v11 = vsub.f32 0.0, %v463_v48 }
 0x200   :  { %v472_v46 = vadd.f32 %v468_v12, %v464_v11  ;;  %v469_v15 = vadd.f32 %v465_v13, %v464_v11  ;;  %v470_v16 = vadd.f32 %v466_v14, %v464_v11  ;;  %v471_v17 = vadd.f32 %v467_v45, %v464_v11 }
 0x202   :  { %476 = vst [vmem:[#allocation11 + $0x18] sm:$0xff] %v472_v46 }
 0x203   :  { %473 = vst [vmem:[#allocation11] sm:$0xff] %v469_v15 }
 0x204   :  { %474 = vst [vmem:[#allocation11 + $0x8] sm:$0xff] %v470_v16 }
 0x205   :  { %475 = vst [vmem:[#allocation11 + $0x10] sm:$0xff] %v471_v17 }
 0x206   :  { %489 = dma.vmem_to_hbm [thread:$0]  %s482_s28, 512, %s484_s8, [#allocation4], %s672_s19, %s672_s19, %s673_s20  }
 0x207   :  { %665 = dma.done.wait [#allocation4], 512  }
 0x208   :  { %666 = vsyncadd [#allocation4], 4294966784 }
 0x209   :  { %494 = vsyncpa [#allocation3], 1 }
 0x20a   :  { %495 = vsyncpa [#allocation6], 1 }
 0x20b   :  { %496 = vsyncpa [#allocation9], 1 }
 0x20c   :  { %497 = vsyncpa [#allocation4], 1 }

</bundles_post_ra>
